<compile_context>
chip_gen: v6e
topology: v6e:2x2x1
jax: 0.10.0
libtpu: 0.0.40
codegen_flags: <defaults>
</compile_context>

<pallas_src>
import jax
import jax.numpy as jnp
from jax.experimental import pallas as pl
from jax.experimental.pallas import tpu as pltpu


def relation_tagger_kernel(enc_ref, fe_ref,
                           wh_t_ref, bh_ref,
                           wt_t_ref, bt_ref,
                           wl0_ref, wl1_ref,
                           out_ref):
    # enc_ref  : (1, S, H) block for the current batch element (S possibly padded)
    # fe_ref   : (1, F, H) field embeddings (shared across batch)
    # wh_t/wt_t: (H, H) head/tail Linear weights, pre-transposed to (in, out)
    # bh/bt    : (1, H) biases of head/tail Linear layers
    # wl0/wl1  : (H, H) W_label_0 / W_label_1 weights in PyTorch (out, in) layout
    # out_ref  : (1, 2, F+S, S)
    enc = enc_ref[0]          # (S, H)
    fe = fe_ref[0]            # (F, H)
    n_f = fe.shape[0]
    n_s = enc.shape[0]

    # nn.Linear: y = x @ W.T + b  (W.T supplied pre-transposed -> plain matmul)
    enc_head = jnp.dot(enc, wh_t_ref[...],
                       preferred_element_type=jnp.float32) + bh_ref[...]
    enc_tail = jnp.dot(enc, wt_t_ref[...],
                       preferred_element_type=jnp.float32) + bt_ref[...]

    # Keep matmul operands in the input dtype (bf16 mode) while accumulating f32.
    enc_head = enc_head.astype(enc.dtype)
    enc_tail = enc_tail.astype(enc.dtype)

    # Single transpose per batch element.  Because W_label_k is in (out, in)
    # layout, W_k @ enc_tail^T == (enc_tail @ W_k^T)^T, i.e. already the
    # (H, S) operand the score matmul wants -- no t0.T / t1.T needed.
    enc_tail_t = enc_tail.T                                   # (H, S)
    t0_t = jnp.dot(wl0_ref[...], enc_tail_t,
                   preferred_element_type=jnp.float32).astype(enc.dtype)
    t1_t = jnp.dot(wl1_ref[...], enc_tail_t,
                   preferred_element_type=jnp.float32).astype(enc.dtype)

    # score_k = [field_embeddings; enc_head] @ t_k^T, written as two row
    # blocks so no concatenated (F+S, H) buffer is materialized.
    out_ref[0, 0, 0:n_f, :] = jnp.dot(fe, t0_t,
                                      preferred_element_type=jnp.float32)
    out_ref[0, 0, n_f:n_f + n_s, :] = jnp.dot(enc_head, t0_t,
                                              preferred_element_type=jnp.float32)
    out_ref[0, 1, 0:n_f, :] = jnp.dot(fe, t1_t,
                                      preferred_element_type=jnp.float32)
    out_ref[0, 1, n_f:n_f + n_s, :] = jnp.dot(enc_head, t1_t,
                                              preferred_element_type=jnp.float32)


def relation_tagger(enc, field_embeddings, w_head, b_head, w_tail, b_tail,
                    w_label_0, w_label_1, *, use_bf16=False):
    B, S, H = enc.shape
    F = field_embeddings.shape[1]

    # Lane-dense output: pad S up to a multiple of 128 so the (F+S, S) score
    # stores are unmasked 128-lane vst's.  Padding is sliced off at the end.
    S_pad = ((S + 127) // 128) * 128
    enc_p = enc if S_pad == S else jnp.pad(enc, ((0, 0), (0, S_pad - S), (0, 0)))

    # Hoist the weight transposes out of the kernel (done once, not B times).
    wh_t = w_head.T
    wt_t = w_tail.T
    bh_2d = b_head.reshape(1, H)
    bt_2d = b_tail.reshape(1, H)
    fe = field_embeddings
    wl0 = w_label_0
    wl1 = w_label_1

    if use_bf16:
        cast = lambda x: x.astype(jnp.bfloat16)
        enc_p, fe, wh_t, bh_2d, wt_t, bt_2d, wl0, wl1 = map(
            cast, (enc_p, fe, wh_t, bh_2d, wt_t, bt_2d, wl0, wl1))

    full2d = lambda b: (0, 0)
    full3d = lambda b: (0, 0, 0)

    out = pl.pallas_call(
        relation_tagger_kernel,
        out_shape=jax.ShapeDtypeStruct((B, 2, F + S_pad, S_pad), jnp.float32),
        grid_spec=pltpu.PrefetchScalarGridSpec(
            num_scalar_prefetch=0,
            grid=(B,),
            in_specs=[
                pl.BlockSpec((1, S_pad, H), lambda b: (b, 0, 0)),   # enc
                pl.BlockSpec((1, F, H), full3d),                    # field embeddings
                pl.BlockSpec((H, H), full2d),                       # W_head^T
                pl.BlockSpec((1, H), full2d),                       # b_head
                pl.BlockSpec((H, H), full2d),                       # W_tail^T
                pl.BlockSpec((1, H), full2d),                       # b_tail
                pl.BlockSpec((H, H), full2d),                       # W_label_0
                pl.BlockSpec((H, H), full2d),                       # W_label_1
            ],
            out_specs=pl.BlockSpec((1, 2, F + S_pad, S_pad),
                                   lambda b: (b, 0, 0, 0)),
        ),
        compiler_params=pltpu.CompilerParams(
            dimension_semantics=("parallel",)),
    )(enc_p, fe, wh_t, bh_2d, wt_t, bt_2d, wl0, wl1)

    if S_pad != S:
        out = out[:, :, :F + S, :S]
    return out


def relation_tagger_ref(enc, field_embeddings, w_head, b_head, w_tail, b_tail,
                        w_label_0, w_label_1):
    # Pure-JAX reference mirroring the PyTorch forward.
    B = enc.shape[0]
    enc_head = enc @ w_head.T + b_head
    enc_tail = enc @ w_tail.T + b_tail
    fe = jnp.broadcast_to(field_embeddings, (B,) + field_embeddings.shape[1:])
    enc_head = jnp.concatenate([fe, enc_head], axis=1)
    t0 = enc_tail @ w_label_0.T
    t1 = enc_tail @ w_label_1.T
    score_0 = jnp.einsum('bmh,bsh->bms', enc_head, t0)
    score_1 = jnp.einsum('bmh,bsh->bms', enc_head, t1)
    return jnp.stack([score_0, score_1], axis=1)


if __name__ == "__main__":
    B, S, H, F = 2, 8, 32, 4   # batch, seq, hidden_size, n_fields

    key = jax.random.PRNGKey(0)
    keys = jax.random.split(key, 8)
    bound = 1.0 / (H ** 0.5)

    enc = jax.random.normal(keys[0], (B, S, H), dtype=jnp.float32)
    # torch.rand -> uniform [0, 1)
    field_embeddings = jax.random.uniform(keys[1], (1, F, H), dtype=jnp.float32)
    # nn.Linear default init ~ uniform(-1/sqrt(H), 1/sqrt(H))
    w_head = jax.random.uniform(keys[2], (H, H), minval=-bound, maxval=bound)
    b_head = jax.random.uniform(keys[3], (H,), minval=-bound, maxval=bound)
    w_tail = jax.random.uniform(keys[4], (H, H), minval=-bound, maxval=bound)
    b_tail = jax.random.uniform(keys[5], (H,), minval=-bound, maxval=bound)
    w_label_0 = jax.random.uniform(keys[6], (H, H), minval=-bound, maxval=bound)
    w_label_1 = jax.random.uniform(keys[7], (H, H), minval=-bound, maxval=bound)

    expected = relation_tagger_ref(enc, field_embeddings, w_head, b_head,
                                   w_tail, b_tail, w_label_0, w_label_1)

    # f32 path (exact check).
    score = relation_tagger(enc, field_embeddings, w_head, b_head,
                            w_tail, b_tail, w_label_0, w_label_1)
    score = jax.block_until_ready(score)
    assert score.shape == (B, 2, F + S, S)
    assert jnp.allclose(score, expected, atol=1e-4, rtol=1e-4)

    # bf16-operand path (f32 accumulation) -- loose tolerance check.
    score_bf16 = relation_tagger(enc, field_embeddings, w_head, b_head,
                                 w_tail, b_tail, w_label_0, w_label_1,
                                 use_bf16=True)
    score_bf16 = jax.block_until_ready(score_bf16)
    assert score_bf16.shape == (B, 2, F + S, S)
    assert jnp.allclose(score_bf16, expected, atol=2e-1, rtol=1e-1)

    print("KERNEL_OK")
</pallas_src>

<mosaic_0001>
module attributes {stable_mosaic.version = 11 : i64} {
  func.func @relation_tagger_kernel(%arg0: i32, %arg1: memref<1x128x32xf32, #tpu.memory_space<vmem>>, %arg2: memref<1x4x32xf32, #tpu.memory_space<vmem>>, %arg3: memref<32x32xf32, #tpu.memory_space<vmem>>, %arg4: memref<1x32xf32, #tpu.memory_space<vmem>>, %arg5: memref<32x32xf32, #tpu.memory_space<vmem>>, %arg6: memref<1x32xf32, #tpu.memory_space<vmem>>, %arg7: memref<32x32xf32, #tpu.memory_space<vmem>>, %arg8: memref<32x32xf32, #tpu.memory_space<vmem>>, %arg9: memref<1x2x132x128xf32, #tpu.memory_space<vmem>>) attributes {dimension_semantics = [#tpu.dimension_semantics<parallel>], iteration_bounds = array<i64: 2>, scalar_prefetch = 0 : i64, scratch_operands = 0 : i64, tpu.core_type = #tpu.core_type<tc>, window_params = [{transform_indices = @transform_0, window_bounds = array<i64: 1, 128, 32>}, {pipeline_mode = #tpu.pipeline_mode<synchronous>, transform_indices = @transform_1, window_bounds = array<i64: 1, 4, 32>}, {pipeline_mode = #tpu.pipeline_mode<synchronous>, transform_indices = @transform_2, window_bounds = array<i64: 32, 32>}, {pipeline_mode = #tpu.pipeline_mode<synchronous>, transform_indices = @transform_3, window_bounds = array<i64: 1, 32>}, {pipeline_mode = #tpu.pipeline_mode<synchronous>, transform_indices = @transform_4, window_bounds = array<i64: 32, 32>}, {pipeline_mode = #tpu.pipeline_mode<synchronous>, transform_indices = @transform_5, window_bounds = array<i64: 1, 32>}, {pipeline_mode = #tpu.pipeline_mode<synchronous>, transform_indices = @transform_6, window_bounds = array<i64: 32, 32>}, {pipeline_mode = #tpu.pipeline_mode<synchronous>, transform_indices = @transform_7, window_bounds = array<i64: 32, 32>}, {transform_indices = @transform_8, window_bounds = array<i64: 1, 2, 132, 128>}]} {
    %c0 = arith.constant 0 : index
    %c0_0 = arith.constant 0 : index
    %c0_1 = arith.constant 0 : index
    %0 = vector.load %arg1[%c0, %c0_0, %c0_1] : memref<1x128x32xf32, #tpu.memory_space<vmem>>, vector<1x128x32xf32>
    %1 = vector.shape_cast %0 : vector<1x128x32xf32> to vector<128x32xf32>
    %c0_2 = arith.constant 0 : index
    %c0_3 = arith.constant 0 : index
    %c0_4 = arith.constant 0 : index
    %2 = vector.load %arg2[%c0_2, %c0_3, %c0_4] : memref<1x4x32xf32, #tpu.memory_space<vmem>>, vector<1x4x32xf32>
    %3 = vector.shape_cast %2 : vector<1x4x32xf32> to vector<4x32xf32>
    %c0_5 = arith.constant 0 : index
    %c0_6 = arith.constant 0 : index
    %4 = vector.load %arg3[%c0_5, %c0_6] : memref<32x32xf32, #tpu.memory_space<vmem>>, vector<32x32xf32>
    %cst = arith.constant dense<0.000000e+00> : vector<128x32xf32>
    %5 = tpu.matmul %1, %4, %cst {dimension_numbers = #tpu.dot_dimension_numbers<[1], [0], [0], [1], [0, 0, 1, 1], [], []>} : vector<128x32xf32>, vector<32x32xf32>, vector<128x32xf32> -> vector<128x32xf32>
    %c0_7 = arith.constant 0 : index
    %c0_8 = arith.constant 0 : index
    %6 = vector.load %arg4[%c0_7, %c0_8] : memref<1x32xf32, #tpu.memory_space<vmem>>, vector<1x32xf32>
    %7 = vector.broadcast %6 : vector<1x32xf32> to vector<128x32xf32>
    %8 = arith.addf %5, %7 : vector<128x32xf32>
    %c0_9 = arith.constant 0 : index
    %c0_10 = arith.constant 0 : index
    %9 = vector.load %arg5[%c0_9, %c0_10] : memref<32x32xf32, #tpu.memory_space<vmem>>, vector<32x32xf32>
    %cst_11 = arith.constant dense<0.000000e+00> : vector<128x32xf32>
    %10 = tpu.matmul %1, %9, %cst_11 {dimension_numbers = #tpu.dot_dimension_numbers<[1], [0], [0], [1], [0, 0, 1, 1], [], []>} : vector<128x32xf32>, vector<32x32xf32>, vector<128x32xf32> -> vector<128x32xf32>
    %c0_12 = arith.constant 0 : index
    %c0_13 = arith.constant 0 : index
    %11 = vector.load %arg6[%c0_12, %c0_13] : memref<1x32xf32, #tpu.memory_space<vmem>>, vector<1x32xf32>
    %12 = vector.broadcast %11 : vector<1x32xf32> to vector<128x32xf32>
    %13 = arith.addf %10, %12 : vector<128x32xf32>
    %14 = tpu.transpose %13, [1, 0] : vector<128x32xf32> -> vector<32x128xf32>
    %c0_14 = arith.constant 0 : index
    %c0_15 = arith.constant 0 : index
    %15 = vector.load %arg7[%c0_14, %c0_15] : memref<32x32xf32, #tpu.memory_space<vmem>>, vector<32x32xf32>
    %cst_16 = arith.constant dense<0.000000e+00> : vector<32x128xf32>
    %16 = tpu.matmul %15, %14, %cst_16 {dimension_numbers = #tpu.dot_dimension_numbers<[1], [0], [0], [1], [0, 0, 1, 1], [], []>} : vector<32x32xf32>, vector<32x128xf32>, vector<32x128xf32> -> vector<32x128xf32>
    %c0_17 = arith.constant 0 : index
    %c0_18 = arith.constant 0 : index
    %17 = vector.load %arg8[%c0_17, %c0_18] : memref<32x32xf32, #tpu.memory_space<vmem>>, vector<32x32xf32>
    %cst_19 = arith.constant dense<0.000000e+00> : vector<32x128xf32>
    %18 = tpu.matmul %17, %14, %cst_19 {dimension_numbers = #tpu.dot_dimension_numbers<[1], [0], [0], [1], [0, 0, 1, 1], [], []>} : vector<32x32xf32>, vector<32x128xf32>, vector<32x128xf32> -> vector<32x128xf32>
    %cst_20 = arith.constant dense<0.000000e+00> : vector<4x128xf32>
    %19 = tpu.matmul %3, %16, %cst_20 {dimension_numbers = #tpu.dot_dimension_numbers<[1], [0], [0], [1], [0, 0, 1, 1], [], []>} : vector<4x32xf32>, vector<32x128xf32>, vector<4x128xf32> -> vector<4x128xf32>
    %c0_21 = arith.constant 0 : index
    %c0_22 = arith.constant 0 : index
    %c0_23 = arith.constant 0 : index
    %c0_24 = arith.constant 0 : index
    %20 = vector.load %arg9[%c0_21, %c0_22, %c0_23, %c0_24] : memref<1x2x132x128xf32, #tpu.memory_space<vmem>>, vector<1x1x4x128xf32>
    %21 = vector.shape_cast %20 : vector<1x1x4x128xf32> to vector<4x128xf32>
    %22 = vector.shape_cast %19 : vector<4x128xf32> to vector<1x1x4x128xf32>
    tpu.vector_store %arg9[%c0_21, %c0_22, %c0_23, %c0_24], %22 {strides = array<i32>} : memref<1x2x132x128xf32, #tpu.memory_space<vmem>>, vector<1x1x4x128xf32>,
    %cst_25 = arith.constant dense<0.000000e+00> : vector<128x128xf32>
    %23 = tpu.matmul %8, %16, %cst_25 {dimension_numbers = #tpu.dot_dimension_numbers<[1], [0], [0], [1], [0, 0, 1, 1], [], []>} : vector<128x32xf32>, vector<32x128xf32>, vector<128x128xf32> -> vector<128x128xf32>
    %c0_26 = arith.constant 0 : index
    %c0_27 = arith.constant 0 : index
    %c4 = arith.constant 4 : index
    %c0_28 = arith.constant 0 : index
    %24 = vector.load %arg9[%c0_26, %c0_27, %c4, %c0_28] : memref<1x2x132x128xf32, #tpu.memory_space<vmem>>, vector<1x1x128x128xf32>
    %25 = vector.shape_cast %24 : vector<1x1x128x128xf32> to vector<128x128xf32>
    %26 = vector.shape_cast %23 : vector<128x128xf32> to vector<1x1x128x128xf32>
    tpu.vector_store %arg9[%c0_26, %c0_27, %c4, %c0_28], %26 {strides = array<i32>} : memref<1x2x132x128xf32, #tpu.memory_space<vmem>>, vector<1x1x128x128xf32>,
    %cst_29 = arith.constant dense<0.000000e+00> : vector<4x128xf32>
    %27 = tpu.matmul %3, %18, %cst_29 {dimension_numbers = #tpu.dot_dimension_numbers<[1], [0], [0], [1], [0, 0, 1, 1], [], []>} : vector<4x32xf32>, vector<32x128xf32>, vector<4x128xf32> -> vector<4x128xf32>
    %c0_30 = arith.constant 0 : index
    %c1 = arith.constant 1 : index
    %c0_31 = arith.constant 0 : index
    %c0_32 = arith.constant 0 : index
    %28 = vector.load %arg9[%c0_30, %c1, %c0_31, %c0_32] : memref<1x2x132x128xf32, #tpu.memory_space<vmem>>, vector<1x1x4x128xf32>
    %29 = vector.shape_cast %28 : vector<1x1x4x128xf32> to vector<4x128xf32>
    %30 = vector.shape_cast %27 : vector<4x128xf32> to vector<1x1x4x128xf32>
    tpu.vector_store %arg9[%c0_30, %c1, %c0_31, %c0_32], %30 {strides = array<i32>} : memref<1x2x132x128xf32, #tpu.memory_space<vmem>>, vector<1x1x4x128xf32>,
    %cst_33 = arith.constant dense<0.000000e+00> : vector<128x128xf32>
    %31 = tpu.matmul %8, %18, %cst_33 {dimension_numbers = #tpu.dot_dimension_numbers<[1], [0], [0], [1], [0, 0, 1, 1], [], []>} : vector<128x32xf32>, vector<32x128xf32>, vector<128x128xf32> -> vector<128x128xf32>
    %c0_34 = arith.constant 0 : index
    %c1_35 = arith.constant 1 : index
    %c4_36 = arith.constant 4 : index
    %c0_37 = arith.constant 0 : index
    %32 = vector.load %arg9[%c0_34, %c1_35, %c4_36, %c0_37] : memref<1x2x132x128xf32, #tpu.memory_space<vmem>>, vector<1x1x128x128xf32>
    %33 = vector.shape_cast %32 : vector<1x1x128x128xf32> to vector<128x128xf32>
    %34 = vector.shape_cast %31 : vector<128x128xf32> to vector<1x1x128x128xf32>
    tpu.vector_store %arg9[%c0_34, %c1_35, %c4_36, %c0_37], %34 {strides = array<i32>} : memref<1x2x132x128xf32, #tpu.memory_space<vmem>>, vector<1x1x128x128xf32>,
    return
  }
  func.func @transform_0(%arg0: i32) -> (i32, i32, i32) {
    %c0_i32 = arith.constant 0 : i32
    %c0_i32_0 = arith.constant 0 : i32
    %c0_i32_1 = arith.constant 0 : i32
    return %arg0, %c0_i32, %c0_i32_0 : i32, i32, i32
  }
  func.func @transform_1(%arg0: i32) -> (i32, i32, i32) {
    %c0_i32 = arith.constant 0 : i32
    %c0_i32_0 = arith.constant 0 : i32
    %c0_i32_1 = arith.constant 0 : i32
    %c0_i32_2 = arith.constant 0 : i32
    return %c0_i32, %c0_i32_0, %c0_i32_1 : i32, i32, i32
  }
  func.func @transform_2(%arg0: i32) -> (i32, i32) {
    %c0_i32 = arith.constant 0 : i32
    %c0_i32_0 = arith.constant 0 : i32
    %c0_i32_1 = arith.constant 0 : i32
    return %c0_i32, %c0_i32_0 : i32, i32
  }
  func.func @transform_3(%arg0: i32) -> (i32, i32) {
    %c0_i32 = arith.constant 0 : i32
    %c0_i32_0 = arith.constant 0 : i32
    %c0_i32_1 = arith.constant 0 : i32
    return %c0_i32, %c0_i32_0 : i32, i32
  }
  func.func @transform_4(%arg0: i32) -> (i32, i32) {
    %c0_i32 = arith.constant 0 : i32
    %c0_i32_0 = arith.constant 0 : i32
    %c0_i32_1 = arith.constant 0 : i32
    return %c0_i32, %c0_i32_0 : i32, i32
  }
  func.func @transform_5(%arg0: i32) -> (i32, i32) {
    %c0_i32 = arith.constant 0 : i32
    %c0_i32_0 = arith.constant 0 : i32
    %c0_i32_1 = arith.constant 0 : i32
    return %c0_i32, %c0_i32_0 : i32, i32
  }
  func.func @transform_6(%arg0: i32) -> (i32, i32) {
    %c0_i32 = arith.constant 0 : i32
    %c0_i32_0 = arith.constant 0 : i32
    %c0_i32_1 = arith.constant 0 : i32
    return %c0_i32, %c0_i32_0 : i32, i32
  }
  func.func @transform_7(%arg0: i32) -> (i32, i32) {
    %c0_i32 = arith.constant 0 : i32
    %c0_i32_0 = arith.constant 0 : i32
    %c0_i32_1 = arith.constant 0 : i32
    return %c0_i32, %c0_i32_0 : i32, i32
  }
  func.func @transform_8(%arg0: i32) -> (i32, i32, i32, i32) {
    %c0_i32 = arith.constant 0 : i32
    %c0_i32_0 = arith.constant 0 : i32
    %c0_i32_1 = arith.constant 0 : i32
    %c0_i32_2 = arith.constant 0 : i32
    return %arg0, %c0_i32, %c0_i32_0, %c0_i32_1 : i32, i32, i32, i32
  }
}

</mosaic_0001>

<bundles_post_ra>
// kernel: tpu_custom_call.1
= control target key start
LH: loop header
LB: loop body
LE: loop exit
PB: predicated region body
PF: predicated region fallthrough
CT: control target
= control target key end

     0   :  { %s2063_s27 = smov 0   ;;  %s2423_s0 = inlined_call_operand.vmem [shape: f32[2,128,32], index: 0, kind: input, shape index: {}]   ;;  %s2424_s1 = inlined_call_operand.vmem [shape: f32[1,4,32], index: 1, kind: input, shape index: {}]   ;;  %s2425_s2 = inlined_call_operand.vmem [shape: f32[32,32], index: 2, kind: input, shape index: {}]   ;;  %s2426_s3 = inlined_call_operand.vmem [shape: f32[1,32], index: 3, kind: input, shape index: {}]   ;;  %s2427_s4 = inlined_call_operand.vmem [shape: f32[32,32], index: 4, kind: input, shape index: {}]   ;;  %s2428_s5 = inlined_call_operand.vmem [shape: f32[1,32], index: 5, kind: input, shape index: {}]   ;;  %s2429_s6 = inlined_call_operand.vmem [shape: f32[32,32], index: 6, kind: input, shape index: {}]   ;;  %s2430_s7 = inlined_call_operand.vmem [shape: f32[32,32], index: 7, kind: input, shape index: {}]   ;;  %s2431_s8 = inlined_call_operand.vmem [shape: f32[2,2,132,128], index: 8, kind: output, shape index: {}]  }
   0x1 LB: > { %s1505_s28 = sadd.s32 4294967295, %s2014_s27   ;;  %p1509_p0 = scmp.ge.s32.totalorder %s2014_s27, 1  ;;  %s2014_s27 = sphi %s2063_s27, %s18_s27  }
   0x2   : > { %p262_p1 = scmp.lt.s32.totalorder %s2014_s27, 3 }
   0x4   : > { %p263_p2 = pnand %p1509_p0, %p262_p1 }
   0x5   : > { %p296_p3 = scmp.lt.s32.totalorder (!%p263_p2), %s1505_s28, 1 }
   0x6   : > { %266 = sbr.rel (%p263_p2) target bundleno = 745 (0x2e9), region = 52 }
   0xb   : > { %v531_v0 = vld [vmem:[%s2427_s4 + $0x18] sm:$0xff]  ;;  %v530_v1 = vld [vmem:[%s2427_s4 + $0x10] sm:$0xff]  ;;  %v529_v2 = vld [vmem:[%s2427_s4 + $0x8] sm:$0xff]  ;;  %s2433_s28 = smov (!%p296_p3, %s1505_s28), 1  ;;  %vm334_vm0 = vcmask 261120   ;;  %vm2017_vm1 = vmmov 0  }
   0xc   : > { %1803 = vmatprep.subr.mxu1 %v531_v0  ;;  %v528_v3 = vld [vmem:[%s2427_s4] sm:$0xff]  ;;  %s1640_s15 = sshll.u32 %s2433_s28, 7  ;;  %v326_v20 = vld [vmem:[%s2425_s2 + $0x18] sm:$0xff]  ;;  %v325_v21 = vld [vmem:[%s2425_s2 + $0x10] sm:$0xff]  ;;  %s1997_s9 = smul.u32 272, %s2433_s28 }
   0xd   : > { %1804 = vmatpush3.msra.mxu1 %v531_v0  ;;  %s2089_s18 = scalar_lea.vmem %s2423_s0, %s1640_s15  ;;  %1771 = vmatprep.subr.mxu0 %v326_v20  ;;  %v324_v22 = vld [vmem:[%s2425_s2 + $0x8] sm:$0xff]  ;;  %v323_v23 = vld [vmem:[%s2425_s2] sm:$0xff]  ;;  %v686_v61 = vld [vmem:[%s2429_s6 + $0x10] sm:$0xff] }
   0xe   : > { %1805 = vmatprep.subr.mxu1 %v530_v1  ;;  %v306_v4 = vld [vmem:[%s2089_s18] sm:$0xff]  ;;  %v307_v5 = vld [vmem:[%s2089_s18 + $0x8] sm:$0xff]  ;;  %v308_v6 = vld [vmem:[%s2089_s18 + $0x10] sm:$0xff]  ;;  %1772 = vmatpush3.msra.mxu0 %v326_v20  ;;  %s2384_s12 = scalar_lea.vmem %s2431_s8, %s1997_s9 }
   0xf   : > { %1806 = vmatpush3.msra.mxu1 %v530_v1  ;;  %1811 = vmatprep.mubr.msk.f32.mxu1 %vm334_vm0, %v306_v4  ;;  %v309_v7 = vld [vmem:[%s2089_s18 + $0x18] sm:$0xff]  ;;  %v310_v8 = vld [vmem:[%s2089_s18 + $0x20] sm:$0xff]  ;;  %v311_v9 = vld [vmem:[%s2089_s18 + $0x28] sm:$0xff]  ;;  %v2016_v1 = vmov 0.0  }
  0x10   : > { %1807 = vmatprep.subr.mxu1 %v529_v2  ;;  %1779 = vmatprep.mubr.msk.f32.mxu0 %vm334_vm0, %v306_v4  ;;  %v312_v10 = vld [vmem:[%s2089_s18 + $0x30] sm:$0xff]  ;;  %v313_v11 = vld [vmem:[%s2089_s18 + $0x38] sm:$0xff]  ;;  %v314_v12 = vld [vmem:[%s2089_s18 + $0x40] sm:$0xff] }
  0x11   : > { %1808 = vmatpush3.msra.mxu1 %v529_v2  ;;  %v315_v13 = vld [vmem:[%s2089_s18 + $0x48] sm:$0xff]  ;;  %v316_v14 = vld [vmem:[%s2089_s18 + $0x50] sm:$0xff]  ;;  %v317_v15 = vld [vmem:[%s2089_s18 + $0x58] sm:$0xff]  ;;  %1773 = vmatprep.subr.mxu0 %v325_v21 }
  0x12   : > { %1809 = vmatprep.subr.mxu1 %v528_v3  ;;  %v318_v16 = vld [vmem:[%s2089_s18 + $0x60] sm:$0xff]  ;;  %v319_v17 = vld [vmem:[%s2089_s18 + $0x68] sm:$0xff]  ;;  %v320_v18 = vld [vmem:[%s2089_s18 + $0x70] sm:$0xff]  ;;  %1774 = vmatpush3.msra.mxu0 %v325_v21 }
  0x13   : > { %1810 = vmatpush3.msra.mxu1 %v528_v3  ;;  %v321_v19 = vld [vmem:[%s2089_s18 + $0x78] sm:$0xff]  ;;  %1775 = vmatprep.subr.mxu0 %v324_v22  ;;  %v684_v24 = vld [vmem:[%s2429_s6] sm:$0xff]  ;;  %v685_v59 = vld [vmem:[%s2429_s6 + $0x8] sm:$0xff] }
  0x14   : > { %1812 = vmatmul.mubr.msk.f32.vlgmr.msra.gmra.mxu1 %vm334_vm0, %v307_v5  ;;  %1776 = vmatpush3.msra.mxu0 %v324_v22  ;;  %v833_v25 = vld [vmem:[%s2430_s7] sm:$0xff]  ;;  %v834_v60 = vld [vmem:[%s2430_s7 + $0x8] sm:$0xff]  ;;  %v835_v62 = vld [vmem:[%s2430_s7 + $0x10] sm:$0xff] }
  0x15   : > { %1814 = vmatprep.mubr.msk.f32.mxu1 %vm334_vm0, %v308_v6  ;;  %1777 = vmatprep.subr.mxu0 %v323_v23  ;;  %v2172_v40 = vld [vmem:[%s2428_s5] ss:$0 sm:$0xff]  ;;  %v687_v63 = vld [vmem:[%s2429_s6 + $0x18] sm:$0xff] }
  0x16   : > { %1778 = vmatpush3.msra.mxu0 %v323_v23  ;;  %v836_v0 = vld [vmem:[%s2430_s7 + $0x18] sm:$0xff] }
  0x17   : > { %1780 = vmatmul.mubr.msk.f32.vlgmr.msra.gmra.mxu0 %vm334_vm0, %v307_v5 }
  0x18   : > { %1815 = vmatmul.mubr.msk.f32.gmra.mxu1 %vm334_vm0, %v309_v7  ;;  %1782 = vmatprep.mubr.msk.f32.mxu0 %vm334_vm0, %v308_v6 }
  0x19   : > { %1817 = vmatprep.mubr.msk.f32.mxu1 %vm334_vm0, %v310_v8 }
  0x1b   : > { %1783 = vmatmul.mubr.msk.f32.gmra.mxu0 %vm334_vm0, %v309_v7 }
  0x1c   : > { %1818 = vmatmul.mubr.msk.f32.gmra.mxu1 %vm334_vm0, %v311_v9  ;;  %1785 = vmatprep.mubr.msk.f32.mxu0 %vm334_vm0, %v310_v8 }
  0x1d   : > { %1820 = vmatprep.mubr.msk.f32.mxu1 %vm334_vm0, %v312_v10 }
  0x1f   : > { %1786 = vmatmul.mubr.msk.f32.gmra.mxu0 %vm334_vm0, %v311_v9 }
  0x20   : > { %1821 = vmatmul.mubr.msk.f32.gmra.mxu1 %vm334_vm0, %v313_v11  ;;  %1788 = vmatprep.mubr.msk.f32.mxu0 %vm334_vm0, %v312_v10 }
  0x21   : > { %1823 = vmatprep.mubr.msk.f32.mxu1 %vm334_vm0, %v314_v12 }
  0x23   : > { %1789 = vmatmul.mubr.msk.f32.gmra.mxu0 %vm334_vm0, %v313_v11 }
  0x24   : > { %1824 = vmatmul.mubr.msk.f32.gmra.mxu1 %vm334_vm0, %v315_v13  ;;  %1791 = vmatprep.mubr.msk.f32.mxu0 %vm334_vm0, %v314_v12 }
  0x25   : > { %1826 = vmatprep.mubr.msk.f32.mxu1 %vm334_vm0, %v316_v14 }
  0x27   : > { %1792 = vmatmul.mubr.msk.f32.gmra.mxu0 %vm334_vm0, %v315_v13 }
  0x28   : > { %1827 = vmatmul.mubr.msk.f32.gmra.mxu1 %vm334_vm0, %v317_v15  ;;  %1794 = vmatprep.mubr.msk.f32.mxu0 %vm334_vm0, %v316_v14 }
  0x29   : > { %1829 = vmatprep.mubr.msk.f32.mxu1 %vm334_vm0, %v318_v16 }
  0x2b   : > { %1795 = vmatmul.mubr.msk.f32.gmra.mxu0 %vm334_vm0, %v317_v15 }
  0x2c   : > { %1830 = vmatmul.mubr.msk.f32.gmra.mxu1 %vm334_vm0, %v319_v17  ;;  %1797 = vmatprep.mubr.msk.f32.mxu0 %vm334_vm0, %v318_v16 }
  0x2d   : > { %1832 = vmatprep.mubr.msk.f32.mxu1 %vm334_vm0, %v320_v18 }
  0x2f   : > { %1798 = vmatmul.mubr.msk.f32.gmra.mxu0 %vm334_vm0, %v319_v17 }
  0x30   : > { %1833 = vmatmul.mubr.msk.f32.gmra.mxu1 %vm334_vm0, %v321_v19  ;;  %1800 = vmatprep.mubr.msk.f32.mxu0 %vm334_vm0, %v320_v18 }
  0x31   : > { %1905 = vmatprep.mubr.msk.f32.mxu1 %vm334_vm0, %v833_v25 }
  0x33   : > { %1801 = vmatmul.mubr.msk.f32.gmra.mxu0 %vm334_vm0, %v321_v19 }
  0x34   : > { %1867 = vmatprep.mubr.msk.f32.mxu0 %vm334_vm0, %v684_v24 }
  0xd4   : > { %v2159_v26 = vpop.f32.mrf.mxu1 }
  0xd5   : > { %v611_v57 = vadd.f32 %v2159_v26, %v2172_v40  ;;  %v2312_v26 = vld [vmem:[%s2426_s3] ss:$0 sm:$0xff] }
  0xd6   : > { %v2161_v27 = vpop.f32.mrf.mxu1 }
  0xd7   : > { %v606_v58 = vadd.f32 %v2172_v40, %v2161_v27  ;;  %v1781_v2 = vpop.f32.mrf.mxu0  ;;  %v322_v27 = vld [vmem:[%s2424_s1] sm:$0xf] }
  0xd8   : > { %v2163_v28 = vpop.f32.mrf.mxu1 }
  0xd9   : > { %v621_v55 = vadd.f32 %v2163_v28, %v2172_v40  ;;  %v449_v3 = vpop.f32.mrf.mxu0 }
  0xda   : > { %v2165_v29 = vpop.f32.mrf.mxu1  ;;  %v450_v28 = vadd.f32 %v2312_v26, %v449_v3 }
  0xdb   : > { %v616_v56 = vadd.f32 %v2172_v40, %v2165_v29  ;;  %v2283_v4 = vpop.f32.mrf.mxu0  ;;  %v455_v29 = vadd.f32 %v1781_v2, %v2312_v26 }
  0xdc   : > { %v1819_v30 = vpop.f32.mrf.mxu1 }
  0xdd   : > { %v631_v53 = vadd.f32 %v1819_v30, %v2172_v40  ;;  %v459_v5 = vpop.f32.mrf.mxu0 }
  0xde   : > { %v2167_v31 = vpop.f32.mrf.mxu1  ;;  %v460_v30 = vadd.f32 %v2312_v26, %v459_v5 }
  0xdf   : > { %v626_v54 = vadd.f32 %v2172_v40, %v2167_v31  ;;  %v2285_v6 = vpop.f32.mrf.mxu0  ;;  %v465_v31 = vadd.f32 %v2283_v4, %v2312_v26 }
  0xe0   : > { %v1822_v32 = vpop.f32.mrf.mxu1 }
  0xe1   : > { %v641_v51 = vadd.f32 %v1822_v32, %v2172_v40  ;;  %v2287_v7 = vpop.f32.mrf.mxu0 }
  0xe2   : > { %v635_v33 = vpop.f32.mrf.mxu1  ;;  %v470_v32 = vadd.f32 %v2312_v26, %v2287_v7 }
  0xe3   : > { %v636_v52 = vadd.f32 %v2172_v40, %v635_v33  ;;  %v2289_v8 = vpop.f32.mrf.mxu0  ;;  %v475_v33 = vadd.f32 %v2285_v6, %v2312_v26 }
  0xe4   : > { %v1825_v34 = vpop.f32.mrf.mxu1 }
  0xe5   : > { %v651_v49 = vadd.f32 %v1825_v34, %v2172_v40  ;;  %v2291_v9 = vpop.f32.mrf.mxu0 }
  0xe6   : > { %v645_v35 = vpop.f32.mrf.mxu1  ;;  %v480_v34 = vadd.f32 %v2312_v26, %v2291_v9 }
  0xe7   : > { %v646_v50 = vadd.f32 %v2172_v40, %v645_v35  ;;  %v2293_v10 = vpop.f32.mrf.mxu0  ;;  %v485_v35 = vadd.f32 %v2289_v8, %v2312_v26 }
  0xe8   : > { %v1828_v36 = vpop.f32.mrf.mxu1 }
  0xe9   : > { %v661_v47 = vadd.f32 %v1828_v36, %v2172_v40  ;;  %v2295_v11 = vpop.f32.mrf.mxu0 }
  0xea   : > { %v655_v37 = vpop.f32.mrf.mxu1  ;;  %v490_v36 = vadd.f32 %v2312_v26, %v2295_v11 }
  0xeb   : > { %v656_v48 = vadd.f32 %v2172_v40, %v655_v37  ;;  %v2297_v12 = vpop.f32.mrf.mxu0  ;;  %v495_v37 = vadd.f32 %v2293_v10, %v2312_v26 }
  0xec   : > { %v1831_v38 = vpop.f32.mrf.mxu1 }
  0xed   : > { %v671_v45 = vadd.f32 %v1831_v38, %v2172_v40  ;;  %v2299_v13 = vpop.f32.mrf.mxu0 }
  0xee   : > { %v665_v39 = vpop.f32.mrf.mxu1  ;;  %v500_v38 = vadd.f32 %v2312_v26, %v2299_v13 }
  0xef   : > { %v666_v46 = vadd.f32 %v2172_v40, %v665_v39  ;;  %v2301_v14 = vpop.f32.mrf.mxu0  ;;  %v505_v39 = vadd.f32 %v2297_v12, %v2312_v26 }
  0xf0   : > { %v1834_v41 = vpop.f32.mrf.mxu1 }
  0xf1   : > { %v681_v42 = vadd.f32 %v1834_v41, %v2172_v40  ;;  %v2303_v15 = vpop.f32.mrf.mxu0  ;;  %v515_v41 = vadd.f32 %v2301_v14, %v2312_v26 }
  0xf2   : > { %v675_v43 = vpop.f32.mrf.mxu1 }
  0xf3   : > { %v676_v44 = vadd.f32 %v2172_v40, %v675_v43  ;;  %1835 = vmatprep.subr.msk.mxu0 %vm334_vm0, %v681_v42  ;;  %1873 = vmatprep.subr.msk.mxu1 %vm334_vm0, %v681_v42  ;;  %v2305_v16 = vpop.f32.mrf.mxu0  ;;  %v510_v40 = vadd.f32 %v2312_v26, %v2303_v15 }
  0xf4   : > { %1836 = vmatpush3.xpose.msk.msra.mxu0 %vm334_vm0, %v681_v42  ;;  %1874 = vmatpush3.xpose.msk.msra.mxu1 %vm334_vm0, %v681_v42  ;;  %v525_v43 = vadd.f32 %v2305_v16, %v2312_v26 }
  0xf5   : > { %1837 = vmatprep.subr.msk.mxu0 %vm334_vm0, %v676_v44  ;;  %1875 = vmatprep.subr.msk.mxu1 %vm334_vm0, %v676_v44  ;;  %v2307_v17 = vpop.f32.mrf.mxu0 }
  0xf6   : > { %v520_v42 = vadd.f32 %v2312_v26, %v2307_v17 }
  0xf8   : > { %1838 = vmatpush3.xpose.msk.msra.mxu0 %vm334_vm0, %v676_v44  ;;  %1876 = vmatpush3.xpose.msk.msra.mxu1 %vm334_vm0, %v676_v44 }
  0xf9   : > { %1839 = vmatprep.subr.msk.mxu0 %vm334_vm0, %v671_v45  ;;  %1877 = vmatprep.subr.msk.mxu1 %vm334_vm0, %v671_v45 }
  0xfc   : > { %1840 = vmatpush3.xpose.msk.msra.mxu0 %vm334_vm0, %v671_v45  ;;  %1878 = vmatpush3.xpose.msk.msra.mxu1 %vm334_vm0, %v671_v45 }
  0xfd   : > { %1841 = vmatprep.subr.msk.mxu0 %vm334_vm0, %v666_v46  ;;  %1879 = vmatprep.subr.msk.mxu1 %vm334_vm0, %v666_v46 }
 0x100   : > { %1842 = vmatpush3.xpose.msk.msra.mxu0 %vm334_vm0, %v666_v46  ;;  %1880 = vmatpush3.xpose.msk.msra.mxu1 %vm334_vm0, %v666_v46 }
 0x101   : > { %1843 = vmatprep.subr.msk.mxu0 %vm334_vm0, %v661_v47  ;;  %1881 = vmatprep.subr.msk.mxu1 %vm334_vm0, %v661_v47 }
 0x104   : > { %1844 = vmatpush3.xpose.msk.msra.mxu0 %vm334_vm0, %v661_v47  ;;  %1882 = vmatpush3.xpose.msk.msra.mxu1 %vm334_vm0, %v661_v47 }
 0x105   : > { %1845 = vmatprep.subr.msk.mxu0 %vm334_vm0, %v656_v48  ;;  %1883 = vmatprep.subr.msk.mxu1 %vm334_vm0, %v656_v48 }
 0x108   : > { %1846 = vmatpush3.xpose.msk.msra.mxu0 %vm334_vm0, %v656_v48  ;;  %1884 = vmatpush3.xpose.msk.msra.mxu1 %vm334_vm0, %v656_v48 }
 0x109   : > { %1847 = vmatprep.subr.msk.mxu0 %vm334_vm0, %v651_v49  ;;  %1885 = vmatprep.subr.msk.mxu1 %vm334_vm0, %v651_v49 }
 0x10c   : > { %1848 = vmatpush3.xpose.msk.msra.mxu0 %vm334_vm0, %v651_v49  ;;  %1886 = vmatpush3.xpose.msk.msra.mxu1 %vm334_vm0, %v651_v49 }
 0x10d   : > { %1849 = vmatprep.subr.msk.mxu0 %vm334_vm0, %v646_v50  ;;  %1887 = vmatprep.subr.msk.mxu1 %vm334_vm0, %v646_v50 }
 0x110   : > { %1850 = vmatpush3.xpose.msk.msra.mxu0 %vm334_vm0, %v646_v50  ;;  %1888 = vmatpush3.xpose.msk.msra.mxu1 %vm334_vm0, %v646_v50 }
 0x111   : > { %1851 = vmatprep.subr.msk.mxu0 %vm334_vm0, %v641_v51  ;;  %1889 = vmatprep.subr.msk.mxu1 %vm334_vm0, %v641_v51 }
 0x114   : > { %1852 = vmatpush3.xpose.msk.msra.mxu0 %vm334_vm0, %v641_v51  ;;  %1890 = vmatpush3.xpose.msk.msra.mxu1 %vm334_vm0, %v641_v51 }
 0x115   : > { %1853 = vmatprep.subr.msk.mxu0 %vm334_vm0, %v636_v52  ;;  %1891 = vmatprep.subr.msk.mxu1 %vm334_vm0, %v636_v52 }
 0x118   : > { %1854 = vmatpush3.xpose.msk.msra.mxu0 %vm334_vm0, %v636_v52  ;;  %1892 = vmatpush3.xpose.msk.msra.mxu1 %vm334_vm0, %v636_v52 }
 0x119   : > { %1855 = vmatprep.subr.msk.mxu0 %vm334_vm0, %v631_v53  ;;  %1893 = vmatprep.subr.msk.mxu1 %vm334_vm0, %v631_v53 }
 0x11c   : > { %1856 = vmatpush3.xpose.msk.msra.mxu0 %vm334_vm0, %v631_v53  ;;  %1894 = vmatpush3.xpose.msk.msra.mxu1 %vm334_vm0, %v631_v53 }
 0x11d   : > { %1857 = vmatprep.subr.msk.mxu0 %vm334_vm0, %v626_v54  ;;  %1895 = vmatprep.subr.msk.mxu1 %vm334_vm0, %v626_v54 }
 0x120   : > { %1858 = vmatpush3.xpose.msk.msra.mxu0 %vm334_vm0, %v626_v54  ;;  %1896 = vmatpush3.xpose.msk.msra.mxu1 %vm334_vm0, %v626_v54 }
 0x121   : > { %1859 = vmatprep.subr.msk.mxu0 %vm334_vm0, %v621_v55  ;;  %1897 = vmatprep.subr.msk.mxu1 %vm334_vm0, %v621_v55 }
 0x124   : > { %1860 = vmatpush3.xpose.msk.msra.mxu0 %vm334_vm0, %v621_v55  ;;  %1898 = vmatpush3.xpose.msk.msra.mxu1 %vm334_vm0, %v621_v55 }
 0x125   : > { %1861 = vmatprep.subr.msk.mxu0 %vm334_vm0, %v616_v56  ;;  %1899 = vmatprep.subr.msk.mxu1 %vm334_vm0, %v616_v56 }
 0x128   : > { %1862 = vmatpush3.xpose.msk.msra.mxu0 %vm334_vm0, %v616_v56  ;;  %1900 = vmatpush3.xpose.msk.msra.mxu1 %vm334_vm0, %v616_v56 }
 0x129   : > { %1863 = vmatprep.subr.msk.mxu0 %vm334_vm0, %v611_v57  ;;  %1901 = vmatprep.subr.msk.mxu1 %vm334_vm0, %v611_v57 }
 0x12c   : > { %1864 = vmatpush3.xpose.msk.msra.mxu0 %vm334_vm0, %v611_v57  ;;  %1902 = vmatpush3.xpose.msk.msra.mxu1 %vm334_vm0, %v611_v57 }
 0x12d   : > { %1865 = vmatprep.subr.msk.mxu0 %vm334_vm0, %v606_v58  ;;  %1903 = vmatprep.subr.msk.mxu1 %vm334_vm0, %v606_v58 }
 0x130   : > { %1866 = vmatpush3.xpose.msk.msra.mxu0 %vm334_vm0, %v606_v58  ;;  %1904 = vmatpush3.xpose.msk.msra.mxu1 %vm334_vm0, %v606_v58 }
 0x131   : > { %1911 = vmatprep.subr.mxu1 %v2016_v1  ;;  %1954 = vmatprep.subr.mxu0 %v2016_v1 }
 0x133   : > { %1868 = vmatmul.mubr.msk.f32.vlgmr.msra.gmra.mxu0 %vm334_vm0, %v685_v59  ;;  %1906 = vmatmul.mubr.msk.f32.vlgmr.msra.gmra.mxu1 %vm334_vm0, %v834_v60 }
 0x134   : > { %1870 = vmatprep.mubr.msk.f32.mxu0 %vm334_vm0, %v686_v61  ;;  %1908 = vmatprep.mubr.msk.f32.mxu1 %vm334_vm0, %v835_v62 }
 0x137   : > { %1871 = vmatmul.mubr.msk.f32.gmra.mxu0 %vm334_vm0, %v687_v63  ;;  %1909 = vmatmul.mubr.msk.f32.gmra.mxu1 %vm334_vm0, %v836_v0 }
 0x138   : > { %1919 = vmatprep.mubr.msk.f32.mxu1 %vm2017_vm1, %v2016_v1  ;;  %1962 = vmatprep.mubr.msk.f32.mxu0 %vm2017_vm1, %v2016_v1 }
 0x1f3   : > { %v1869_v18 = vpop.f32.mrf.mxu0  ;;  %v1907_v19 = vpop.f32.mrf.mxu1 }
 0x1f5   : > { %v814_v20 = vpop.f32.mrf.mxu0  ;;  %v915_v21 = vpop.f32.mrf.mxu1 }
 0x1f7   : > { %v1872_v22 = vpop.f32.mrf.mxu0  ;;  %v1910_v23 = vpop.f32.mrf.mxu1 }
 0x1f8   : > { %1912 = vmatpush3.msra.mxu1 %v1872_v22  ;;  %1955 = vmatpush3.msra.mxu0 %v1910_v23 }
 0x1f9   : > { %v824_v24 = vpop.f32.mrf.mxu0  ;;  %v925_v25 = vpop.f32.mrf.mxu1  ;;  %1913 = vmatprep.subr.mxu1 %v2016_v1  ;;  %1956 = vmatprep.subr.mxu0 %v2016_v1 }
 0x1fa   : > { %1914 = vmatpush3.msra.mxu1 %v824_v24  ;;  %1957 = vmatpush3.msra.mxu0 %v925_v25 }
 0x1fb   : > { %1915 = vmatprep.subr.mxu1 %v2016_v1  ;;  %1958 = vmatprep.subr.mxu0 %v2016_v1 }
 0x1fc   : > { %1916 = vmatpush3.msra.mxu1 %v1869_v18  ;;  %1959 = vmatpush3.msra.mxu0 %v1907_v19 }
 0x1fd   : > { %1917 = vmatprep.subr.mxu1 %v2016_v1  ;;  %1960 = vmatprep.subr.mxu0 %v2016_v1 }
 0x1fe   : > { %1918 = vmatpush3.msra.mxu1 %v814_v20  ;;  %1961 = vmatpush3.msra.mxu0 %v915_v21 }
 0x1ff   : > { %1920 = vmatmul.mubr.msk.f32.vlgmr.msra.gmra.mxu1 %vm334_vm0, %v322_v27  ;;  %1922 = vmatprep.subr.mxu1 %v1872_v22 }
 0x200   : > { %1963 = vmatmul.mubr.msk.f32.vlgmr.msra.gmra.mxu0 %vm334_vm0, %v322_v27  ;;  %1965 = vmatprep.subr.mxu0 %v1910_v23 }
 0x201   : > { %1923 = vmatpush3.msra.mxu1 %v1872_v22  ;;  %1930 = vmatprep.mubr.msk.f32.mxu1 %vm334_vm0, %v450_v28 }
 0x202   : > { %1966 = vmatpush3.msra.mxu0 %v1910_v23  ;;  %1973 = vmatprep.mubr.msk.f32.mxu0 %vm334_vm0, %v450_v28 }
 0x203   : > { %1924 = vmatprep.subr.mxu1 %v824_v24  ;;  %1967 = vmatprep.subr.mxu0 %v925_v25 }
 0x204   : > { %1925 = vmatpush3.msra.mxu1 %v824_v24  ;;  %1968 = vmatpush3.msra.mxu0 %v925_v25 }
 0x205   : > { %1926 = vmatprep.subr.mxu1 %v1869_v18  ;;  %1969 = vmatprep.subr.mxu0 %v1907_v19 }
 0x206   : > { %1927 = vmatpush3.msra.mxu1 %v1869_v18  ;;  %1970 = vmatpush3.msra.mxu0 %v1907_v19 }
 0x207   : > { %1928 = vmatprep.subr.mxu1 %v814_v20  ;;  %1971 = vmatprep.subr.mxu0 %v915_v21 }
 0x208   : > { %1929 = vmatpush3.msra.mxu1 %v814_v20  ;;  %1972 = vmatpush3.msra.mxu0 %v915_v21 }
 0x209   : > { %1931 = vmatmul.mubr.msk.f32.vlgmr.msra.gmra.mxu1 %vm334_vm0, %v455_v29  ;;  %1974 = vmatmul.mubr.msk.f32.vlgmr.msra.gmra.mxu0 %vm334_vm0, %v455_v29 }
 0x20a   : > { %1933 = vmatprep.mubr.msk.f32.mxu1 %vm334_vm0, %v460_v30  ;;  %1976 = vmatprep.mubr.msk.f32.mxu0 %vm334_vm0, %v460_v30 }
 0x20d   : > { %1934 = vmatmul.mubr.msk.f32.gmra.mxu1 %vm334_vm0, %v465_v31  ;;  %1977 = vmatmul.mubr.msk.f32.gmra.mxu0 %vm334_vm0, %v465_v31 }
 0x20e   : > { %1936 = vmatprep.mubr.msk.f32.mxu1 %vm334_vm0, %v470_v32  ;;  %1979 = vmatprep.mubr.msk.f32.mxu0 %vm334_vm0, %v470_v32 }
 0x211   : > { %1937 = vmatmul.mubr.msk.f32.gmra.mxu1 %vm334_vm0, %v475_v33  ;;  %1980 = vmatmul.mubr.msk.f32.gmra.mxu0 %vm334_vm0, %v475_v33 }
 0x212   : > { %1939 = vmatprep.mubr.msk.f32.mxu1 %vm334_vm0, %v480_v34  ;;  %1982 = vmatprep.mubr.msk.f32.mxu0 %vm334_vm0, %v480_v34 }
 0x215   : > { %1940 = vmatmul.mubr.msk.f32.gmra.mxu1 %vm334_vm0, %v485_v35  ;;  %1983 = vmatmul.mubr.msk.f32.gmra.mxu0 %vm334_vm0, %v485_v35 }
 0x216   : > { %1942 = vmatprep.mubr.msk.f32.mxu1 %vm334_vm0, %v490_v36  ;;  %1985 = vmatprep.mubr.msk.f32.mxu0 %vm334_vm0, %v490_v36 }
 0x219   : > { %1943 = vmatmul.mubr.msk.f32.gmra.mxu1 %vm334_vm0, %v495_v37  ;;  %1986 = vmatmul.mubr.msk.f32.gmra.mxu0 %vm334_vm0, %v495_v37 }
 0x21a   : > { %1945 = vmatprep.mubr.msk.f32.mxu1 %vm334_vm0, %v500_v38  ;;  %1988 = vmatprep.mubr.msk.f32.mxu0 %vm334_vm0, %v500_v38 }
 0x21d   : > { %1946 = vmatmul.mubr.msk.f32.gmra.mxu1 %vm334_vm0, %v505_v39  ;;  %1989 = vmatmul.mubr.msk.f32.gmra.mxu0 %vm334_vm0, %v505_v39 }
 0x21e   : > { %1948 = vmatprep.mubr.msk.f32.mxu1 %vm334_vm0, %v510_v40  ;;  %1991 = vmatprep.mubr.msk.f32.mxu0 %vm334_vm0, %v510_v40 }
 0x221   : > { %1949 = vmatmul.mubr.msk.f32.gmra.mxu1 %vm334_vm0, %v515_v41  ;;  %1992 = vmatmul.mubr.msk.f32.gmra.mxu0 %vm334_vm0, %v515_v41 }
 0x222   : > { %1951 = vmatprep.mubr.msk.f32.mxu1 %vm334_vm0, %v520_v42  ;;  %1994 = vmatprep.mubr.msk.f32.mxu0 %vm334_vm0, %v520_v42 }
 0x225   : > { %1952 = vmatmul.mubr.msk.f32.gmra.mxu1 %vm334_vm0, %v525_v43  ;;  %1995 = vmatmul.mubr.msk.f32.gmra.mxu0 %vm334_vm0, %v525_v43 }
 0x2bf   : > { %v1003_v44 = vpop.f32.mrf.mxu1 }
 0x2c0   : > { %1007 = vst [vmem:[%s2384_s12] sm:$0xf] %v1003_v44  ;;  %v1283_v45 = vpop.f32.mrf.mxu0 }
 0x2c1   : > { %1605 = vst [vmem:[%s2384_s12 + $0x88] sm:$0xf] %v1283_v45  ;;  %v1921_v46 = vpop.f32.mrf.mxu1 }
 0x2c2   : > { %v1964_v47 = vpop.f32.mrf.mxu0 }
 0x2c9   : > { %v1932_v48 = vpop.f32.mrf.mxu1  ;;  %v1975_v49 = vpop.f32.mrf.mxu0 }
 0x2ca   : > { %1202 = vst [vmem:[%s2384_s12 + $0xc] sm:$0xff] %v1932_v48  ;;  %1623 = vst [vmem:[%s2384_s12 + $0x94] sm:$0xff] %v1975_v49 }
 0x2cb   : > { %v1122_v50 = vpop.f32.mrf.mxu1  ;;  %v1355_v51 = vpop.f32.mrf.mxu0 }
 0x2cc   : > { %1201 = vst [vmem:[%s2384_s12 + $0x4] sm:$0xff] %v1122_v50  ;;  %1622 = vst [vmem:[%s2384_s12 + $0x8c] sm:$0xff] %v1355_v51 }
 0x2cd   : > { %v1935_v52 = vpop.f32.mrf.mxu1  ;;  %v1978_v53 = vpop.f32.mrf.mxu0 }
 0x2ce   : > { %1204 = vst [vmem:[%s2384_s12 + $0x1c] sm:$0xff] %v1935_v52  ;;  %1625 = vst [vmem:[%s2384_s12 + $0xa4] sm:$0xff] %v1978_v53 }
 0x2cf   : > { %v1132_v54 = vpop.f32.mrf.mxu1  ;;  %v1365_v55 = vpop.f32.mrf.mxu0 }
 0x2d0   : > { %1203 = vst [vmem:[%s2384_s12 + $0x14] sm:$0xff] %v1132_v54  ;;  %1624 = vst [vmem:[%s2384_s12 + $0x9c] sm:$0xff] %v1365_v55 }
 0x2d1   : > { %v1938_v56 = vpop.f32.mrf.mxu1  ;;  %v1981_v57 = vpop.f32.mrf.mxu0 }
 0x2d2   : > { %1206 = vst [vmem:[%s2384_s12 + $0x2c] sm:$0xff] %v1938_v56  ;;  %1627 = vst [vmem:[%s2384_s12 + $0xb4] sm:$0xff] %v1981_v57 }
 0x2d3   : > { %v1142_v58 = vpop.f32.mrf.mxu1  ;;  %v1375_v59 = vpop.f32.mrf.mxu0 }
 0x2d4   : > { %1205 = vst [vmem:[%s2384_s12 + $0x24] sm:$0xff] %v1142_v58  ;;  %1626 = vst [vmem:[%s2384_s12 + $0xac] sm:$0xff] %v1375_v59 }
 0x2d5   : > { %v1941_v60 = vpop.f32.mrf.mxu1  ;;  %v1984_v61 = vpop.f32.mrf.mxu0 }
 0x2d6   : > { %1208 = vst [vmem:[%s2384_s12 + $0x3c] sm:$0xff] %v1941_v60  ;;  %1629 = vst [vmem:[%s2384_s12 + $0xc4] sm:$0xff] %v1984_v61 }
 0x2d7   : > { %v1152_v62 = vpop.f32.mrf.mxu1  ;;  %v1385_v63 = vpop.f32.mrf.mxu0 }
 0x2d8   : > { %1207 = vst [vmem:[%s2384_s12 + $0x34] sm:$0xff] %v1152_v62  ;;  %1628 = vst [vmem:[%s2384_s12 + $0xbc] sm:$0xff] %v1385_v63 }
 0x2d9   : > { %v1944_v0 = vpop.f32.mrf.mxu1  ;;  %v1987_v1 = vpop.f32.mrf.mxu0 }
 0x2da   : > { %1210 = vst [vmem:[%s2384_s12 + $0x4c] sm:$0xff] %v1944_v0  ;;  %1631 = vst [vmem:[%s2384_s12 + $0xd4] sm:$0xff] %v1987_v1 }
 0x2db   : > { %v1162_v2 = vpop.f32.mrf.mxu1  ;;  %v1395_v3 = vpop.f32.mrf.mxu0 }
 0x2dc   : > { %1209 = vst [vmem:[%s2384_s12 + $0x44] sm:$0xff] %v1162_v2  ;;  %1630 = vst [vmem:[%s2384_s12 + $0xcc] sm:$0xff] %v1395_v3 }
 0x2dd   : > { %v1947_v4 = vpop.f32.mrf.mxu1  ;;  %v1990_v5 = vpop.f32.mrf.mxu0 }
 0x2de   : > { %1212 = vst [vmem:[%s2384_s12 + $0x5c] sm:$0xff] %v1947_v4  ;;  %1633 = vst [vmem:[%s2384_s12 + $0xe4] sm:$0xff] %v1990_v5 }
 0x2df   : > { %v1172_v6 = vpop.f32.mrf.mxu1  ;;  %v1405_v7 = vpop.f32.mrf.mxu0 }
 0x2e0   : > { %1211 = vst [vmem:[%s2384_s12 + $0x54] sm:$0xff] %v1172_v6  ;;  %1632 = vst [vmem:[%s2384_s12 + $0xdc] sm:$0xff] %v1405_v7 }
 0x2e1   : > { %v1950_v8 = vpop.f32.mrf.mxu1  ;;  %v1993_v9 = vpop.f32.mrf.mxu0 }
 0x2e2   : > { %1214 = vst [vmem:[%s2384_s12 + $0x6c] sm:$0xff] %v1950_v8  ;;  %1635 = vst [vmem:[%s2384_s12 + $0xf4] sm:$0xff] %v1993_v9 }
 0x2e3   : > { %v1182_v10 = vpop.f32.mrf.mxu1  ;;  %v1415_v11 = vpop.f32.mrf.mxu0 }
 0x2e4   : > { %1213 = vst [vmem:[%s2384_s12 + $0x64] sm:$0xff] %v1182_v10  ;;  %1634 = vst [vmem:[%s2384_s12 + $0xec] sm:$0xff] %v1415_v11 }
 0x2e5   : > { %v1953_v12 = vpop.f32.mrf.mxu1  ;;  %v1996_v13 = vpop.f32.mrf.mxu0 }
 0x2e6   : > { %1216 = vst [vmem:[%s2384_s12 + $0x7c] sm:$0xff] %v1953_v12  ;;  %1637 = vst [vmem:[%s2384_s12 + $0x104] sm:$0xff] %v1996_v13 }
 0x2e7   : > { %v1192_v14 = vpop.f32.mrf.mxu1  ;;  %v1425_v15 = vpop.f32.mrf.mxu0 }
 0x2e8   : > { %1215 = vst [vmem:[%s2384_s12 + $0x74] sm:$0xff] %v1192_v14  ;;  %1636 = vst [vmem:[%s2384_s12 + $0xfc] sm:$0xff] %v1425_v15 }
 0x2e9 PF: > { %s18_s27 = sadd.s32 1, %s2014_s27  }
 0x2ea   : > { %p15_p4 = scmp.ge.s32.totalorder %s18_s27, 4  }
 0x2ec   :  { %17 = sbr.rel (!%p15_p4) target bundleno = 1 (0x1), region = 83 }

</bundles_post_ra>
